<compile_context>
chip_gen: v6e
topology: v6e:2x2x1
jax: 0.10.0
libtpu: 0.0.40
codegen_flags: <defaults>
</compile_context>

<pallas_src>
import jax
import jax.numpy as jnp
import numpy as np
from jax.experimental import pallas as pl
from jax.experimental.pallas import tpu as pltpu


# ----------------------------- fused kernel body ----------------------------

def _srgcn_fused_body(e_ref, x_ref, theta_ref, out_ref, xhat_ref, supports_ref):
    # e_ref:        (TT, N, E)      dn_embeddings for this chunk of time-steps
    # x_ref:        (B, TT, N, C)   inputs for the same chunk
    # theta_ref:    (TT, S, Kc*F)   fused [alpha; beta; theta], k-major along lanes
    # out_ref:      (B, TT, N, F)
    # xhat_ref:     (B, TT, N, S)   S = 2C + 1
    # supports_ref: (TT, N, N) or None (only when spatial_attention=True)
    TT, N, _ = e_ref.shape
    B = x_ref.shape[0]
    S = xhat_ref.shape[-1]
    F = out_ref.shape[-1]
    Kc = theta_ref.shape[-1] // F

    # ---- DASW: softmax(relu(E_t E_t^T)) -- row-softmax pieces + its diagonal ----
    # TODO(synk): at production N the (TT, N, N) gram must be row-tiled to fit VMEM
    # (first on v7x's 64 MiB); trivial at these shapes, so a single block is used.
    e = e_ref[...].astype(jnp.float32)                               # (TT, N, E)
    logits = jnp.einsum('tne,tse->tns', e, e,
                        preferred_element_type=jnp.float32)          # (TT, N, N)
    logits = jnp.maximum(logits, 0.0)                                # relu
    m = jnp.max(logits, axis=-1, keepdims=True)                      # (TT, N, 1)
    ex = jnp.exp(logits - m)                                         # (TT, N, N)
    denom = jnp.sum(ex, axis=-1, keepdims=True)                      # (TT, N, 1)
    inv = pl.reciprocal(denom, approx=False)                         # EUP slot, exact
    # diag(E_t E_t^T)[n] = ||e_n||^2 >= 0, so relu is the identity on the diagonal;
    # compute it directly from e (no strided diagonal gather of the NxN matrix).
    dlog = jnp.sum(e * e, axis=-1, keepdims=True)                    # (TT, N, 1)
    diag = jnp.exp(dlog - m) * inv                                   # diag(supports_t)
    if supports_ref is not None:
        supports_ref[...] = (ex * inv).astype(supports_ref.dtype)

    # ---- x_t_hat = [1 | x | diag(supports_t) * x] ----
    # 'btnc,tnn->btnc' reads only the support diagonal.
    x = x_ref[...].astype(jnp.float32)                               # (B, TT, N, C)
    wx = x * diag                                                    # (TT,N,1) broadcast
    ones = jnp.ones(x.shape[:-1] + (1,), jnp.float32)
    xhat = jnp.concatenate([ones, x, wx], axis=-1)                   # (B, TT, N, S)
    xhat_ref[...] = xhat.astype(xhat_ref.dtype)

    # ---- one fused MXU matmul per t over all Kc Chebyshev orders + diag epilogue ----
    theta = theta_ref[...].astype(jnp.float32)                       # (TT, S, Kc*F)
    for ti in range(TT):                                             # static, small TT
        y = jnp.dot(xhat[:, ti].reshape(B * N, S), theta[ti],
                    preferred_element_type=jnp.float32)              # (B*N, Kc*F)
        y = y.reshape(B, N, Kc * F)
        d_t = diag[ti]                                               # (N, 1)
        # out[b,n,:] = sum_k diag(T_k(L_hat_t))[n] * y[b,n,k*F:(k+1)*F]
        acc = y[:, :, 0:F]                                           # T_0 = I -> diag 1
        prev2 = jnp.ones_like(d_t)
        prev1 = d_t                                                  # T_1 = L_hat
        acc = acc + d_t * y[:, :, F:2 * F]
        for k in range(2, Kc):                                       # static, small Kc
            cur = 2.0 * d_t * prev1 - prev2                          # elementwise recursion
            acc = acc + cur * y[:, :, k * F:(k + 1) * F]
            prev2, prev1 = prev1, cur
        out_ref[:, ti] = jnp.maximum(acc, 0.0).astype(out_ref.dtype)  # relu


# ----------------------------- wrapper (forward) ----------------------------

def srgcn_forward(params, x, s_w=None, spatial_attention=False, t_grid=None):
    """Pallas implementation of SRGCN.forward (s_w=None branch), single fused kernel."""
    B, T, N, C = x.shape
    E = params["dn_embeddings"].shape[-1]
    Kc = params["alpha"].shape[1]
    F_out = params["beta"].shape[-1]
    S = 2 * C + 1
    assert Kc >= 2, "cheb_k >= 2 assumed (as in the original module)"
    # TODO(synk): the s_w is not None branch (scaled_Laplacian via torch.linalg.eigvals
    # of a general matrix) has no TPU/Pallas equivalent; only the s_w=None path exists.
    assert s_w is None

    # Grid over T: 2 "parallel" steps (keeps both v7x TCs busy, only one extra ~0.35us
    # step on single-TC v5e/v6e); a single block when T is odd or 1.
    if t_grid is None:
        t_grid = 2 if (T >= 2 and T % 2 == 0) else 1
    assert T % t_grid == 0
    TT = T // t_grid

    # Fuse [alpha ; beta ; theta] along the contraction dim and the Chebyshev order
    # along output lanes (k-major, f-minor): one MXU matmul per t, no bias plumbing.
    alpha_exp = jnp.broadcast_to(params["alpha"][:, :, None, None], (T, Kc, 1, F_out))
    theta_hat = jnp.concatenate([alpha_exp, params["beta"], params["theta"]], axis=-2)   # (T,Kc,S,F)
    theta_fused = theta_hat.transpose(0, 2, 1, 3).reshape(T, S, Kc * F_out)              # (T,S,Kc*F)

    out_shapes = [jax.ShapeDtypeStruct((B, T, N, F_out), x.dtype),
                  jax.ShapeDtypeStruct((B, T, N, S), x.dtype)]
    out_specs = [pl.BlockSpec((B, TT, N, F_out), lambda g: (0, g, 0, 0)),
                 pl.BlockSpec((B, TT, N, S), lambda g: (0, g, 0, 0))]
    if spatial_attention:
        out_shapes.append(jax.ShapeDtypeStruct((T, N, N), jnp.float32))
        out_specs.append(pl.BlockSpec((TT, N, N), lambda g: (g, 0, 0)))
        kernel = lambda e, xr, th, o, xh, sp: _srgcn_fused_body(e, xr, th, o, xh, sp)
    else:
        kernel = lambda e, xr, th, o, xh: _srgcn_fused_body(e, xr, th, o, xh, None)

    results = pl.pallas_call(
        kernel,
        out_shape=tuple(out_shapes),
        grid=(t_grid,),
        in_specs=[
            pl.BlockSpec((TT, N, E), lambda g: (g, 0, 0)),               # dn_embeddings
            pl.BlockSpec((B, TT, N, C), lambda g: (0, g, 0, 0)),         # x
            pl.BlockSpec((TT, S, Kc * F_out), lambda g: (g, 0, 0)),      # fused theta
        ],
        out_specs=tuple(out_specs),
        compiler_params=pltpu.CompilerParams(dimension_semantics=("parallel",)),
    )(params["dn_embeddings"], x, theta_fused)

    if spatial_attention:
        out, x_t_hat, supports = results
        return out, supports, x_t_hat
    out, x_t_hat = results
    return out, None, x_t_hat


# ----------------------------- pure-JAX reference ---------------------------

def reference(params, x):
    E = params["dn_embeddings"]
    logits = jnp.einsum('tne,tse->tns', E, E)
    supports = jax.nn.softmax(jax.nn.relu(logits), axis=-1)
    T, N, _ = supports.shape
    B, _, _, C = x.shape
    Kc = params["alpha"].shape[1]
    F_out = params["beta"].shape[-1]
    cheb = [jnp.broadcast_to(jnp.eye(N, dtype=x.dtype), (T, N, N)), supports]
    for i in range(2, Kc):
        cheb.append(2 * supports * cheb[i - 1] - cheb[i - 2])
    T_L_hat = jnp.stack(cheb, axis=1)                               # (T, Kc, N, N)
    w_x = jnp.einsum('btnc,tnn->btnc', x, supports)
    ones = jnp.ones((B, T, N, 1), x.dtype)
    x_hat = jnp.concatenate([ones, x, w_x], axis=-1)
    alpha_exp = jnp.broadcast_to(params["alpha"][:, :, None, None], (T, Kc, 1, F_out))
    theta_hat = jnp.concatenate([alpha_exp, params["beta"], params["theta"]], axis=-2)
    s_r = jnp.einsum('btns,tksf->btknf', x_hat, theta_hat)
    out = jnp.einsum('tknn,btknf->btnf', T_L_hat, s_r)
    return jax.nn.relu(out), supports, x_hat


# ----------------------------------- main ------------------------------------

if __name__ == "__main__":
    key = jax.random.PRNGKey(0)
    # module hyper-params (g_lambda / l_mu only matter on the s_w != None branch)
    B, T, N, C = 2, 4, 16, 4          # batch, in_len, num_nodes, in_dim
    embed_dim, F_out, cheb_k = 8, 8, 3

    k1, k2, k3, k4, k5 = jax.random.split(key, 5)
    params = {
        "dn_embeddings": jax.random.normal(k1, (T, N, embed_dim), jnp.float32),
        "alpha": jax.random.normal(k2, (T, cheb_k), jnp.float32),
        "beta": jax.random.normal(k3, (T, cheb_k, C, F_out), jnp.float32),
        "theta": jax.random.normal(k4, (T, cheb_k, C, F_out), jnp.float32),
    }
    x = jax.random.normal(k5, (B, T, N, C), jnp.float32)

    ref_out, ref_supports, ref_xhat = reference(params, x)

    # spatial_attention=False path (no dense supports emitted).
    out, attn, x_t_hat = srgcn_forward(params, x, s_w=None, spatial_attention=False)
    jax.block_until_ready((out, x_t_hat))
    np.testing.assert_allclose(np.asarray(out), np.asarray(ref_out), rtol=1e-4, atol=1e-4)
    np.testing.assert_allclose(np.asarray(x_t_hat), np.asarray(ref_xhat), rtol=1e-4, atol=1e-4)
    assert attn is None

    # spatial_attention=True path (dense supports are also returned).
    out2, attn2, xhat2 = srgcn_forward(params, x, s_w=None, spatial_attention=True)
    jax.block_until_ready((out2, attn2, xhat2))
    np.testing.assert_allclose(np.asarray(attn2), np.asarray(ref_supports), rtol=1e-4, atol=1e-4)
    np.testing.assert_allclose(np.asarray(out2), np.asarray(ref_out), rtol=1e-4, atol=1e-4)
    np.testing.assert_allclose(np.asarray(xhat2), np.asarray(ref_xhat), rtol=1e-4, atol=1e-4)

    print("KERNEL_OK")
</pallas_src>

<mosaic_0001>
module attributes {stable_mosaic.version = 11 : i64} {
  func.func @_lambda_(%arg0: i32, %arg1: memref<2x16x8xf32, #tpu.memory_space<vmem>>, %arg2: memref<2x2x16x4xf32, #tpu.memory_space<vmem>>, %arg3: memref<2x9x24xf32, #tpu.memory_space<vmem>>, %arg4: memref<2x2x16x8xf32, #tpu.memory_space<vmem>>, %arg5: memref<2x2x16x9xf32, #tpu.memory_space<vmem>>) attributes {dimension_semantics = [#tpu.dimension_semantics<parallel>], iteration_bounds = array<i64: 2>, scalar_prefetch = 0 : i64, scratch_operands = 0 : i64, tpu.core_type = #tpu.core_type<tc>, window_params = [{transform_indices = @transform_0, window_bounds = array<i64: 2, 16, 8>}, {transform_indices = @transform_1, window_bounds = array<i64: 2, 2, 16, 4>}, {transform_indices = @transform_2, window_bounds = array<i64: 2, 9, 24>}, {transform_indices = @transform_3, window_bounds = array<i64: 2, 2, 16, 8>}, {transform_indices = @transform_4, window_bounds = array<i64: 2, 2, 16, 9>}]} {
    %c0 = arith.constant 0 : index
    %c0_0 = arith.constant 0 : index
    %c0_1 = arith.constant 0 : index
    %0 = vector.load %arg1[%c0, %c0_0, %c0_1] : memref<2x16x8xf32, #tpu.memory_space<vmem>>, vector<2x16x8xf32>
    "tpu.trace_start"() <{level = 10 : i32, message = "tne,tse->tns"}> : () -> ()
    %cst = arith.constant dense<0.000000e+00> : vector<2x16x16xf32>
    %1 = tpu.matmul %0, %0, %cst {dimension_numbers = #tpu.dot_dimension_numbers<[2], [2], [1], [1], [0, 0, 0, 1, 1, 1], [0], [0]>} : vector<2x16x8xf32>, vector<2x16x8xf32>, vector<2x16x16xf32> -> vector<2x16x16xf32>
    "tpu.trace_stop"() : () -> ()
    %cst_2 = arith.constant 0.000000e+00 : f32
    %2 = vector.broadcast %cst_2 : f32 to vector<2x16x16xf32>
    %3 = arith.maximumf %1, %2 : vector<2x16x16xf32>
    %cst_3 = arith.constant dense<0xFF800000> : vector<2x16xf32>
    %4 = vector.multi_reduction <maximumf>, %3, %cst_3 [2] : vector<2x16x16xf32> to vector<2x16xf32>
    %5 = vector.shape_cast %4 : vector<2x16xf32> to vector<2x16x1xf32>
    %6 = vector.broadcast %5 : vector<2x16x1xf32> to vector<2x16x16xf32>
    %7 = arith.subf %3, %6 : vector<2x16x16xf32>
    %8 = math.exp %7 : vector<2x16x16xf32>
    %cst_4 = arith.constant dense<0.000000e+00> : vector<2x16xf32>
    %9 = vector.multi_reduction <add>, %8, %cst_4 [2] : vector<2x16x16xf32> to vector<2x16xf32>
    %10 = vector.shape_cast %9 : vector<2x16xf32> to vector<2x16x1xf32>
    %11 = tpu.reciprocal %10 : vector<2x16x1xf32> -> vector<2x16x1xf32>
    %12 = arith.mulf %0, %0 : vector<2x16x8xf32>
    %cst_5 = arith.constant dense<0.000000e+00> : vector<2x16xf32>
    %13 = vector.multi_reduction <add>, %12, %cst_5 [2] : vector<2x16x8xf32> to vector<2x16xf32>
    %14 = vector.shape_cast %13 : vector<2x16xf32> to vector<2x16x1xf32>
    %15 = arith.subf %14, %5 : vector<2x16x1xf32>
    %16 = math.exp %15 : vector<2x16x1xf32>
    %17 = arith.mulf %16, %11 : vector<2x16x1xf32>
    %c0_6 = arith.constant 0 : index
    %c0_7 = arith.constant 0 : index
    %c0_8 = arith.constant 0 : index
    %c0_9 = arith.constant 0 : index
    %18 = vector.load %arg2[%c0_6, %c0_7, %c0_8, %c0_9] : memref<2x2x16x4xf32, #tpu.memory_space<vmem>>, vector<2x2x16x4xf32>
    %19 = vector.shape_cast %17 : vector<2x16x1xf32> to vector<1x2x16x1xf32>
    %20 = vector.broadcast %19 : vector<1x2x16x1xf32> to vector<2x2x16x4xf32>
    %21 = arith.mulf %18, %20 : vector<2x2x16x4xf32>
    %cst_10 = arith.constant 1.000000e+00 : f32
    %22 = vector.broadcast %cst_10 : f32 to vector<2x2x16x1xf32>
    %23 = tpu.concatenate %22, %18, %21 in 3 : vector<2x2x16x1xf32>, vector<2x2x16x4xf32>, vector<2x2x16x4xf32> -> vector<2x2x16x9xf32>
    %c0_11 = arith.constant 0 : index
    %c0_12 = arith.constant 0 : index
    %c0_13 = arith.constant 0 : index
    %c0_14 = arith.constant 0 : index
    %24 = vector.load %arg5[%c0_11, %c0_12, %c0_13, %c0_14] : memref<2x2x16x9xf32, #tpu.memory_space<vmem>>, vector<2x2x16x9xf32>
    tpu.vector_store %arg5[%c0_11, %c0_12, %c0_13, %c0_14], %23 {strides = array<i32>} : memref<2x2x16x9xf32, #tpu.memory_space<vmem>>, vector<2x2x16x9xf32>,
    %c0_15 = arith.constant 0 : index
    %c0_16 = arith.constant 0 : index
    %c0_17 = arith.constant 0 : index
    %25 = vector.load %arg3[%c0_15, %c0_16, %c0_17] : memref<2x9x24xf32, #tpu.memory_space<vmem>>, vector<2x9x24xf32>
    %26 = vector.extract_strided_slice %23 {offsets = [0, 0, 0, 0], sizes = [2, 1, 16, 9], strides = [1, 1, 1, 1]} : vector<2x2x16x9xf32> to vector<2x1x16x9xf32>
    %27 = vector.shape_cast %26 : vector<2x1x16x9xf32> to vector<2x16x9xf32>
    %28 = vector.shape_cast %27 : vector<2x16x9xf32> to vector<32x9xf32>
    %29 = vector.extract_strided_slice %25 {offsets = [0, 0, 0], sizes = [1, 9, 24], strides = [1, 1, 1]} : vector<2x9x24xf32> to vector<1x9x24xf32>
    %30 = vector.shape_cast %29 : vector<1x9x24xf32> to vector<9x24xf32>
    %cst_18 = arith.constant dense<0.000000e+00> : vector<32x24xf32>
    %31 = tpu.matmul %28, %30, %cst_18 {dimension_numbers = #tpu.dot_dimension_numbers<[1], [0], [0], [1], [0, 0, 1, 1], [], []>} : vector<32x9xf32>, vector<9x24xf32>, vector<32x24xf32> -> vector<32x24xf32>
    %32 = vector.shape_cast %31 : vector<32x24xf32> to vector<2x16x24xf32>
    %33 = vector.extract_strided_slice %17 {offsets = [0, 0, 0], sizes = [1, 16, 1], strides = [1, 1, 1]} : vector<2x16x1xf32> to vector<1x16x1xf32>
    %34 = vector.shape_cast %33 : vector<1x16x1xf32> to vector<16x1xf32>
    %35 = vector.extract_strided_slice %32 {offsets = [0, 0, 0], sizes = [2, 16, 8], strides = [1, 1, 1]} : vector<2x16x24xf32> to vector<2x16x8xf32>
    %cst_19 = arith.constant 1.000000e+00 : f32
    %36 = vector.broadcast %cst_19 : f32 to vector<16x1xf32>
    %37 = vector.extract_strided_slice %32 {offsets = [0, 0, 8], sizes = [2, 16, 8], strides = [1, 1, 1]} : vector<2x16x24xf32> to vector<2x16x8xf32>
    %38 = vector.shape_cast %34 : vector<16x1xf32> to vector<1x16x1xf32>
    %39 = vector.broadcast %38 : vector<1x16x1xf32> to vector<2x16x8xf32>
    %40 = arith.mulf %39, %37 : vector<2x16x8xf32>
    %41 = arith.addf %35, %40 : vector<2x16x8xf32>
    %cst_20 = arith.constant 2.000000e+00 : f32
    %42 = vector.broadcast %cst_20 : f32 to vector<16x1xf32>
    %43 = arith.mulf %42, %34 : vector<16x1xf32>
    %44 = arith.mulf %43, %34 : vector<16x1xf32>
    %45 = arith.subf %44, %36 : vector<16x1xf32>
    %46 = vector.extract_strided_slice %32 {offsets = [0, 0, 16], sizes = [2, 16, 8], strides = [1, 1, 1]} : vector<2x16x24xf32> to vector<2x16x8xf32>
    %47 = vector.shape_cast %45 : vector<16x1xf32> to vector<1x16x1xf32>
    %48 = vector.broadcast %47 : vector<1x16x1xf32> to vector<2x16x8xf32>
    %49 = arith.mulf %48, %46 : vector<2x16x8xf32>
    %50 = arith.addf %41, %49 : vector<2x16x8xf32>
    %cst_21 = arith.constant 0.000000e+00 : f32
    %51 = vector.broadcast %cst_21 : f32 to vector<2x16x8xf32>
    %52 = arith.maximumf %50, %51 : vector<2x16x8xf32>
    %c0_22 = arith.constant 0 : index
    %c0_23 = arith.constant 0 : index
    %c0_24 = arith.constant 0 : index
    %c0_25 = arith.constant 0 : index
    %53 = vector.load %arg4[%c0_22, %c0_23, %c0_24, %c0_25] : memref<2x2x16x8xf32, #tpu.memory_space<vmem>>, vector<2x1x16x8xf32>
    %54 = vector.shape_cast %53 : vector<2x1x16x8xf32> to vector<2x16x8xf32>
    %55 = vector.shape_cast %52 : vector<2x16x8xf32> to vector<2x1x16x8xf32>
    tpu.vector_store %arg4[%c0_22, %c0_23, %c0_24, %c0_25], %55 {strides = array<i32>} : memref<2x2x16x8xf32, #tpu.memory_space<vmem>>, vector<2x1x16x8xf32>,
    %56 = vector.extract_strided_slice %23 {offsets = [0, 1, 0, 0], sizes = [2, 1, 16, 9], strides = [1, 1, 1, 1]} : vector<2x2x16x9xf32> to vector<2x1x16x9xf32>
    %57 = vector.shape_cast %56 : vector<2x1x16x9xf32> to vector<2x16x9xf32>
    %58 = vector.shape_cast %57 : vector<2x16x9xf32> to vector<32x9xf32>
    %59 = vector.extract_strided_slice %25 {offsets = [1, 0, 0], sizes = [1, 9, 24], strides = [1, 1, 1]} : vector<2x9x24xf32> to vector<1x9x24xf32>
    %60 = vector.shape_cast %59 : vector<1x9x24xf32> to vector<9x24xf32>
    %cst_26 = arith.constant dense<0.000000e+00> : vector<32x24xf32>
    %61 = tpu.matmul %58, %60, %cst_26 {dimension_numbers = #tpu.dot_dimension_numbers<[1], [0], [0], [1], [0, 0, 1, 1], [], []>} : vector<32x9xf32>, vector<9x24xf32>, vector<32x24xf32> -> vector<32x24xf32>
    %62 = vector.shape_cast %61 : vector<32x24xf32> to vector<2x16x24xf32>
    %63 = vector.extract_strided_slice %17 {offsets = [1, 0, 0], sizes = [1, 16, 1], strides = [1, 1, 1]} : vector<2x16x1xf32> to vector<1x16x1xf32>
    %64 = vector.shape_cast %63 : vector<1x16x1xf32> to vector<16x1xf32>
    %65 = vector.extract_strided_slice %62 {offsets = [0, 0, 0], sizes = [2, 16, 8], strides = [1, 1, 1]} : vector<2x16x24xf32> to vector<2x16x8xf32>
    %cst_27 = arith.constant 1.000000e+00 : f32
    %66 = vector.broadcast %cst_27 : f32 to vector<16x1xf32>
    %67 = vector.extract_strided_slice %62 {offsets = [0, 0, 8], sizes = [2, 16, 8], strides = [1, 1, 1]} : vector<2x16x24xf32> to vector<2x16x8xf32>
    %68 = vector.shape_cast %64 : vector<16x1xf32> to vector<1x16x1xf32>
    %69 = vector.broadcast %68 : vector<1x16x1xf32> to vector<2x16x8xf32>
    %70 = arith.mulf %69, %67 : vector<2x16x8xf32>
    %71 = arith.addf %65, %70 : vector<2x16x8xf32>
    %cst_28 = arith.constant 2.000000e+00 : f32
    %72 = vector.broadcast %cst_28 : f32 to vector<16x1xf32>
    %73 = arith.mulf %72, %64 : vector<16x1xf32>
    %74 = arith.mulf %73, %64 : vector<16x1xf32>
    %75 = arith.subf %74, %66 : vector<16x1xf32>
    %76 = vector.extract_strided_slice %62 {offsets = [0, 0, 16], sizes = [2, 16, 8], strides = [1, 1, 1]} : vector<2x16x24xf32> to vector<2x16x8xf32>
    %77 = vector.shape_cast %75 : vector<16x1xf32> to vector<1x16x1xf32>
    %78 = vector.broadcast %77 : vector<1x16x1xf32> to vector<2x16x8xf32>
    %79 = arith.mulf %78, %76 : vector<2x16x8xf32>
    %80 = arith.addf %71, %79 : vector<2x16x8xf32>
    %cst_29 = arith.constant 0.000000e+00 : f32
    %81 = vector.broadcast %cst_29 : f32 to vector<2x16x8xf32>
    %82 = arith.maximumf %80, %81 : vector<2x16x8xf32>
    %c0_30 = arith.constant 0 : index
    %c1 = arith.constant 1 : index
    %c0_31 = arith.constant 0 : index
    %c0_32 = arith.constant 0 : index
    %83 = vector.load %arg4[%c0_30, %c1, %c0_31, %c0_32] : memref<2x2x16x8xf32, #tpu.memory_space<vmem>>, vector<2x1x16x8xf32>
    %84 = vector.shape_cast %83 : vector<2x1x16x8xf32> to vector<2x16x8xf32>
    %85 = vector.shape_cast %82 : vector<2x16x8xf32> to vector<2x1x16x8xf32>
    tpu.vector_store %arg4[%c0_30, %c1, %c0_31, %c0_32], %85 {strides = array<i32>} : memref<2x2x16x8xf32, #tpu.memory_space<vmem>>, vector<2x1x16x8xf32>,
    return
  }
  func.func @transform_0(%arg0: i32) -> (i32, i32, i32) {
    %c0_i32 = arith.constant 0 : i32
    %c0_i32_0 = arith.constant 0 : i32
    %c0_i32_1 = arith.constant 0 : i32
    return %arg0, %c0_i32, %c0_i32_0 : i32, i32, i32
  }
  func.func @transform_1(%arg0: i32) -> (i32, i32, i32, i32) {
    %c0_i32 = arith.constant 0 : i32
    %c0_i32_0 = arith.constant 0 : i32
    %c0_i32_1 = arith.constant 0 : i32
    %c0_i32_2 = arith.constant 0 : i32
    return %c0_i32, %arg0, %c0_i32_0, %c0_i32_1 : i32, i32, i32, i32
  }
  func.func @transform_2(%arg0: i32) -> (i32, i32, i32) {
    %c0_i32 = arith.constant 0 : i32
    %c0_i32_0 = arith.constant 0 : i32
    %c0_i32_1 = arith.constant 0 : i32
    return %arg0, %c0_i32, %c0_i32_0 : i32, i32, i32
  }
  func.func @transform_3(%arg0: i32) -> (i32, i32, i32, i32) {
    %c0_i32 = arith.constant 0 : i32
    %c0_i32_0 = arith.constant 0 : i32
    %c0_i32_1 = arith.constant 0 : i32
    %c0_i32_2 = arith.constant 0 : i32
    return %c0_i32, %arg0, %c0_i32_0, %c0_i32_1 : i32, i32, i32, i32
  }
  func.func @transform_4(%arg0: i32) -> (i32, i32, i32, i32) {
    %c0_i32 = arith.constant 0 : i32
    %c0_i32_0 = arith.constant 0 : i32
    %c0_i32_1 = arith.constant 0 : i32
    %c0_i32_2 = arith.constant 0 : i32
    return %c0_i32, %arg0, %c0_i32_0, %c0_i32_1 : i32, i32, i32, i32
  }
}

</mosaic_0001>

<bundles_post_ra>
// kernel: tpu_custom_call.1
= control target key start
LH: loop header
LB: loop body
LE: loop exit
PB: predicated region body
PF: predicated region fallthrough
CT: control target
= control target key end

     0   :  { %s1471_s15 = smov 0   ;;  %s1473_s16 = smov 0   ;;  %s1720_s0 = inlined_call_operand.vmem [shape: f32[4,16,8], index: 0, kind: input, shape index: {}]   ;;  %s1721_s1 = inlined_call_operand.vmem [shape: f32[2,4,16,4], index: 1, kind: input, shape index: {}]   ;;  %s1722_s2 = inlined_call_operand.vmem [shape: f32[4,9,24], index: 2, kind: input, shape index: {}]   ;;  %s1723_s3 = inlined_call_operand.vmem [shape: f32[2,4,16,8], index: 3, kind: output, shape index: {0}]   ;;  %s1724_s4 = inlined_call_operand.vmem [shape: f32[2,4,16,9], index: 4, kind: output, shape index: {1}]  }
   0x1   :  { %s1475_s17 = smov 0  }
   0x2 LB: > { %s1487_s18 = sadd.s32 4294967295, %s1440_s17   ;;  %s1490_s19 = sadd.s32 1, %s1440_s17   ;;  %s1440_s17 = sphi %s1475_s17, %s1728_s17   ;;  %s1436_s16 = sphi %s1473_s16, %s1727_s16   ;;  %s1432_s15 = sphi %s1471_s15, %s1726_s15  }
   0x3   : > { %s45_s20 = ssub.s32 %s1440_s17, %s1490_s19  ;;  %s48_s21 = sadd.s32 1, %s1436_s16 }
   0x4   : > { %p46_p0 = scmp.eq.s32.totalorder %s45_s20, 0  ;;  %p55_p1 = scmp.ne.s32.totalorder %s1436_s16, %s1432_s15 }
   0x5   : > { %p56_p2 = scmp.eq.s32.totalorder %s1440_s17, 0  ;;  %p111_p3 = scmp.eq.s32.totalorder %s1487_s18, 1 }
   0x6   : > { %s1500_s22 = scalar_select %p46_p0, %s1436_s16, %s48_s21  }
   0x7   : > { %p57_p4 = por %p56_p2, %p55_p1  ;;  %p1502_p5 = por %p111_p3, %p55_p1 }
   0x8   : > { %p1253_p6 = scmp.ge.s32.totalorder %s1440_s17, 2 }
   0xa   : > { %159 = sbr.rel (%p1253_p6) target bundleno = 23 (0x17), region = 16 }
   0xf   : > { %172 = sbr.rel (!%p57_p4) target bundleno = 23 (0x17), region = 24  ;;  %s174_s24 = sand.u32 (%p57_p4), 1, %s1436_s16  }
  0x10   : > { %s1305_s25 = sshll.u32 (%p57_p4), %s1440_s17, 5  ;;  %s1254_s26 = sshll.u32 (%p57_p4), %s174_s24, 6 }
  0x11   : > { %s180_s29 = scalar_lea.vmem (%p57_p4), %s1721_s1, %s1305_s25  ;;  %s176_s30 = scalar_lea.vmem (%p57_p4), [#allocation2], %s1254_s26 }
  0x12   : > { %v223_v0 = vld [vmem:[%s180_s29] sm:$0xff] (%p57_p4)  ;;  %v225_v1 = vld [vmem:[%s180_s29 + $0x8] sm:$0xff] (%p57_p4)  ;;  %v227_v2 = vld [vmem:[%s180_s29 + $0x10] sm:$0xff] (%p57_p4) }
  0x13   : > { %224 = vst [vmem:[%s176_s30] sm:$0xff] (%p57_p4), %v223_v0  ;;  %226 = vst [vmem:[%s176_s30 + $0x8] sm:$0xff] (%p57_p4), %v225_v1  ;;  %v229_v3 = vld [vmem:[%s180_s29 + $0x18] sm:$0xff] (%p57_p4)  ;;  %v231_v4 = vld [vmem:[%s180_s29 + $0x40] sm:$0xff] (%p57_p4) }
  0x14   : > { %228 = vst [vmem:[%s176_s30 + $0x10] sm:$0xff] %v227_v2  ;;  %v233_v5 = vld [vmem:[%s180_s29 + $0x48] sm:$0xff]  ;;  %230 = vst [vmem:[%s176_s30 + $0x18] sm:$0xff] %v229_v3  ;;  %v235_v6 = vld [vmem:[%s180_s29 + $0x50] sm:$0xff] }
  0x15   : > { %232 = vst [vmem:[%s176_s30 + $0x20] sm:$0xff] %v231_v4  ;;  %234 = vst [vmem:[%s176_s30 + $0x28] sm:$0xff] %v233_v5  ;;  %v237_v7 = vld [vmem:[%s180_s29 + $0x58] sm:$0xff] }
  0x16   : > { %236 = vst [vmem:[%s176_s30 + $0x30] sm:$0xff] %v235_v6  ;;  %238 = vst [vmem:[%s176_s30 + $0x38] sm:$0xff] %v237_v7 }
  0x17 PF: > { %p1258_p7 = scmp.ge.s32.totalorder %s1440_s17, 1  ;;  %p253_p8 = scmp.lt.s32.totalorder %s1440_s17, 3 }
  0x19   : > { %p254_p9 = pnand %p1258_p7, %p253_p8 }
  0x1a   : > { %s1262_s5 = sshll.u32 (!%p254_p9), %s1487_s18, 1  ;;  %s260_s10 = sand.u32 (!%p254_p9), 1, %s1432_s15  }
  0x1b   : > { %257 = sbr.rel (%p254_p9) target bundleno = 1039 (0x40f), region = 66  ;;  %p301_p10 = scmp.lt.s32.totalorder (!%p254_p9), %s1262_s5, 3 }
  0x1c   : > { %s1548_s11 = sshll.u32 (!%p254_p9), %s260_s10, 6  ;;  %s1442_s13 = smov (!%p254_p9), 1  }
  0x1d   : > { %s262_s12 = scalar_lea.vmem (!%p254_p9), [#allocation2], %s1548_s11  ;;  %s1443_s20 = smov (!%p254_p9), 5  }
  0x1e   : > { %s1599_s21 = scalar_lea.vmem (!%p254_p9), [#allocation4], %s1548_s11  ;;  %s1444_s24 = smov (!%p254_p9), 120  }
  0x1f   : > { %s1445_s25 = smov (!%p254_p9), 112   ;;  %s1664_s26 = scalar_lea.vmem (!%p254_p9), [#allocation3], %s1548_s11 }
  0x20   : > { %s1730_s5 = smov (!%p301_p10, %s1262_s5), 3  ;;  %vm321_vm0 = vcmask 64512   ;;  %vm488_vm1 = vcmask 130048   ;;  %v1551_v52 = vld [vmem:[%s262_s12 + $0x10] sm:$0xff]  ;;  %v1553_v53 = vld [vmem:[%s262_s12] sm:$0xff]  ;;  %v562_v54 = vld [vmem:[%s262_s12 + $0x8] sm:$0xff] }
  0x21   : > { %s1306_s6 = sshll.u32 %s1730_s5, 4  ;;  %v1557_v55 = vld [vmem:[%s262_s12 + $0x20] sm:$0xff]  ;;  %v564_v56 = vld [vmem:[%s262_s12 + $0x18] sm:$0xff]  ;;  %v1560_v57 = vld [vmem:[%s262_s12 + $0x28] sm:$0xff]  ;;  %vm684_vm2 = vcmask 1040384   ;;  %vm650_vm3 = vcmask 39936  }
  0x22   : > { %s305_s9 = scalar_lea.vmem %s1720_s0, %s1306_s6  ;;  %v1562_v58 = vld [vmem:[%s262_s12 + $0x30] sm:$0xff]  ;;  %v1566_v59 = vld [vmem:[%s262_s12 + $0x38] sm:$0xff]  ;;  %s313_s17 = scalar_lea.vmem %s1722_s2, %s1306_s6  ;;  %vm641_vm4 = vcmask 7168   ;;  %vm659_vm5 = vcmask 72704  }
  0x23   : > { %v318_v8 = vld [vmem:[%s305_s9 + $0x8] sm:$0xff]  ;;  %v320_v9 = vld [vmem:[%s305_s9 + $0x18] sm:$0xff]  ;;  %v317_v10 = vld [vmem:[%s305_s9] sm:$0xff]  ;;  %s1309_s27 = sshll.u32 (%p1502_p5), %s1487_s18, 5 }
  0x24   : > { %1332 = vmatprep.subr.msk.mxu0 %vm321_vm0, %v318_v8  ;;  %1339 = vmatprep.subr.msk.mxu1 %vm321_vm0, %v320_v9  ;;  %v319_v11 = vld [vmem:[%s305_s9 + $0x10] sm:$0xff]  ;;  %v529_v24 = vmul.f32 %v317_v10, %v317_v10  ;;  %v532_v27 = vmul.f32 %v320_v9, %v320_v9  ;;  %v530_v29 = vmul.f32 %v318_v8, %v318_v8  ;;  %s1012_s30 = scalar_lea.vmem (%p1502_p5), %s1723_s3, %s1309_s27 }
  0x25   : > { %1333 = vmatpush3.xpose.msk.msra.mxu0 %vm321_vm0, %v318_v8  ;;  %1340 = vmatpush3.xpose.msk.msra.mxu1 %vm321_vm0, %v320_v9  ;;  %v531_v23 = vmul.f32 %v319_v11, %v319_v11 }
  0x26   : > { %1334 = vmatprep.subr.msk.mxu0 %vm321_vm0, %v317_v10  ;;  %1341 = vmatprep.subr.msk.mxu1 %vm321_vm0, %v319_v11  ;;  %v533_v28 = vsel %vm321_vm0, %v529_v24, 0.0  ;;  %v542_v30 = vsel %vm321_vm0, %v532_v27, 0.0  ;;  %v536_v31 = vsel %vm321_vm0, %v530_v29, 0.0 }
  0x27   : > { %1336 = vmatprep.mubr.msk.f32.mxu0 %vm321_vm0, %v317_v10  ;;  %1343 = vmatprep.mubr.msk.f32.mxu1 %vm321_vm0, %v319_v11  ;;  %v539_v26 = vsel %vm321_vm0, %v531_v23, 0.0 }
  0x29   : > { %1335 = vmatpush3.xpose.msk.msra.mxu0 %vm321_vm0, %v317_v10  ;;  %1342 = vmatpush3.xpose.msk.msra.mxu1 %vm321_vm0, %v319_v11 }
  0x2c   : > { %1337 = vmatmul.mubr.msk.f32.vlgmr.msra.gmra.mxu0 %vm321_vm0, %v318_v8  ;;  %1344 = vmatmul.mubr.msk.f32.vlgmr.msra.gmra.mxu1 %vm321_vm0, %v320_v9 }
  0xec   : > { %v1338_v12 = vpop.f32.mrf.mxu0  ;;  %v1345_v13 = vpop.f32.mrf.mxu1 }
  0xed   : > { %v485_v14 = vmax.f32 %v1338_v12, 0.0  ;;  %v487_v15 = vmax.f32 %v1345_v13, 0.0  ;;  %v669_v12 = vld [vmem:[%s313_s17 + $0x8] sm:$0x1]  ;;  %v668_v13 = vld [vmem:[%s313_s17] sm:$0xff] }
  0xee   : > { %v394_v16 = vpop.f32.mrf.mxu0  ;;  %v475_v17 = vpop.f32.mrf.mxu1  ;;  %1346 = vmatprep.subr.msk.mxu0 %vm684_vm2, %v669_v12 }
  0xef   : > { %v484_v18 = vmax.f32 %v394_v16, 0.0  ;;  %v492_v19 = vsel %vm488_vm1, %v485_v14, -inf  ;;  %v486_v20 = vmax.f32 %v475_v17, 0.0  ;;  %v498_v22 = vsel %vm488_vm1, %v487_v15, -inf  ;;  %1347 = vmatpush3.msk.msra.mxu0 %vm684_vm2, %v669_v12  ;;  %v670_v17 = vld [vmem:[%s313_s17 + $0x10] sm:$0xff] }
  0xf0   : > { %493 = vmax.xlane.f32.xlu1 %v492_v19  ;;  %1348 = vmatprep.subr.mxu0 %v668_v13 }
  0xf1   : > { %v489_v21 = vsel %vm488_vm1, %v484_v18, -inf  ;;  %v495_v25 = vsel %vm488_vm1, %v486_v20, -inf  ;;  %1349 = vmatpush3.msra.mxu0 %v668_v13 }
  0xf2   : > { %490 = vmax.xlane.f32.xlu0 %v489_v21 }
  0xf4   : > { %499 = vmax.xlane.f32.xlu1 %v498_v22 }
  0xf6   : > { %496 = vmax.xlane.f32.xlu0 %v495_v25 }
  0xf8   : > { %540 = vadd.xlane.f32.xlu1 %v539_v26 }
  0xfa   : > { %534 = vadd.xlane.f32.xlu0 %v533_v28 }
  0xfc   : > { %543 = vadd.xlane.f32.xlu1 %v542_v30 }
  0xfe   : > { %537 = vadd.xlane.f32.xlu0 %v536_v31 }
 0x179   : > { %v494_v32 = vpop.xlane.xlu1 %493 }
 0x17a   : > { %v502_v33 = vsub.f32 %v485_v14, %v494_v32 }
 0x17b   : > { %v491_v34 = vpop.xlane.xlu0 %490 }
 0x17c   : > { %v501_v35 = vsub.f32 %v484_v18, %v491_v34  ;;  %v507_v37 = vmul.f32 1.442695, %v502_v33 }
 0x17d   : > { %v500_v36 = vpop.xlane.xlu1 %499 }
 0x17e   : > { %v505_v38 = vmul.f32 1.442695, %v501_v35  ;;  %v504_v39 = vsub.f32 %v487_v15, %v500_v36  ;;  %v671_v15 = vld [vmem:[%s313_s17 + $0x18] sm:$0x1] }
 0x17f   : > { %v497_v40 = vpop.xlane.xlu0 %496  ;;  %1356 = vmatprep.subr.msk.mxu1 %vm684_vm2, %v671_v15 }
 0x180   : > { %1394 = vpow2.f32 %v505_v38  ;;  %v503_v41 = vsub.f32 %v486_v20, %v497_v40  ;;  %v511_v42 = vmul.f32 1.442695, %v504_v39  ;;  %1357 = vmatpush3.msk.msra.mxu1 %vm684_vm2, %v671_v15 }
 0x181   : > { %1396 = vpow2.f32 %v507_v37  ;;  %v541_v61 = vpop.xlane.xlu1 %540  ;;  %1358 = vmatprep.subr.mxu1 %v670_v17 }
 0x182   : > { %v509_v43 = vmul.f32 1.442695, %v503_v41  ;;  %v547_v6 = vsub.f32 %v541_v61, %v497_v40  ;;  %1359 = vmatpush3.msra.mxu1 %v670_v17 }
 0x183   : > { %v535_v60 = vpop.xlane.xlu0 %534 }
 0x184   : > { %1398 = vpow2.f32 %v509_v43  ;;  %v545_v63 = vsub.f32 %v535_v60, %v491_v34  ;;  %v553_v10 = vmul.f32 1.442695, %v547_v6 }
 0x185   : > { %1400 = vpow2.f32 %v511_v42  ;;  %v544_v0 = vpop.xlane.xlu1 %543 }
 0x186   : > { %v549_v2 = vmul.f32 1.442695, %v545_v63  ;;  %v548_v3 = vsub.f32 %v544_v0, %v500_v36 }
 0x187   : > { %v538_v62 = vpop.xlane.xlu0 %537 }
 0x188   : > { %v546_v1 = vsub.f32 %v538_v62, %v494_v32  ;;  %1402 = vpow2.f32 %v549_v2  ;;  %v555_v7 = vmul.f32 1.442695, %v548_v3 }
 0x18a   : > { %v551_v4 = vmul.f32 1.442695, %v546_v1 }
 0x18c   : > { %1404 = vpow2.f32 %v551_v4 }
 0x18d   : > { %v1395_v44 = vpop.eup %1394 }
 0x18e   : > { %v513_v45 = vsel %vm488_vm1, %v1395_v44, 0.0  ;;  %v1397_v46 = vpop.eup %1396 }
 0x18f   : > { %514 = vadd.xlane.f32.xlu0 %v513_v45  ;;  %v516_v48 = vsel %vm488_vm1, %v1397_v46, 0.0 }
 0x191   : > { %v1399_v47 = vpop.eup %1398 }
 0x192   : > { %v519_v49 = vsel %vm488_vm1, %v1399_v47, 0.0  ;;  %v1401_v50 = vpop.eup %1400 }
 0x193   : > { %517 = vadd.xlane.f32.xlu0 %v516_v48  ;;  %520 = vadd.xlane.f32.xlu1 %v519_v49  ;;  %v522_v51 = vsel %vm488_vm1, %v1401_v50, 0.0 }
 0x195   : > { %v1403_v14 = vpop.eup %1402 }
 0x197   : > { %523 = vadd.xlane.f32.xlu1 %v522_v51 }
 0x199   : > { %v1405_v16 = vpop.eup %1404 }
 0x1a8   : > { %589 = vrot.lane.b32.xlu1 %v1551_v52, %s1442_s13 }
 0x1a9   : > { %585 = vrot.lane.b32.xlu0 %v1553_v53, %s1442_s13 }
 0x1ac   : > { %587 = vrot.lane.b32.xlu1 %v562_v54, %s1442_s13 }
 0x1ad   : > { %593 = vrot.lane.b32.xlu0 %v1557_v55, %s1442_s13 }
 0x1b0   : > { %591 = vrot.lane.b32.xlu1 %v564_v56, %s1442_s13 }
 0x1b1   : > { %595 = vrot.lane.b32.xlu0 %v1560_v57, %s1442_s13 }
 0x1b4   : > { %597 = vrot.lane.b32.xlu1 %v1562_v58, %s1442_s13 }
 0x1b8   : > { %599 = vrot.lane.b32.xlu1 %v1566_v59, %s1442_s13 }
 0x218   : > { %v515_v5 = vpop.xlane.xlu0 %514 }
 0x219   : > { %1406 = vrcp.f32 %v515_v5 }
 0x21c   : > { %v521_v8 = vpop.xlane.xlu1 %520  ;;  %v518_v9 = vpop.xlane.xlu0 %517 }
 0x21d   : > { %1408 = vrcp.f32 %v518_v9 }
 0x21e   : > { %1410 = vpow2.f32 %v555_v7 }
 0x21f   : > { %1412 = vrcp.f32 %v521_v8 }
 0x220   : > { %v524_v11 = vpop.xlane.xlu1 %523  ;;  %v586_v38 = vpop.permute.xlu0 %585 }
 0x221   : > { %1414 = vrcp.f32 %v524_v11  ;;  %v642_v49 = vsel %vm641_vm4, 1.0, %v586_v38 }
 0x222   : > { %1416 = vpow2.f32 %v553_v10 }
 0x224   : > { %v590_v36 = vpop.permute.xlu1 %589  ;;  %v594_v40 = vpop.permute.xlu0 %593 }
 0x226   : > { %v1407_v18 = vpop.eup %1406 }
 0x227   : > { %v1576_v24 = vmul.f32 %v1407_v18, %v1403_v14 }
 0x228   : > { %v588_v37 = vpop.permute.xlu1 %587  ;;  %v596_v42 = vpop.permute.xlu0 %595 }
 0x229   : > { %v569_v30 = vmul.f32 %v1553_v53, %v1576_v24  ;;  %v573_v32 = vmul.f32 %v1557_v55, %v1576_v24  ;;  %v643_v44 = vsel %vm641_vm4, 1.0, %v588_v37  ;;  %v644_v53 = vsel %vm641_vm4, 1.0, %v590_v36 }
 0x22a   : > { %v1409_v19 = vpop.eup %1408  ;;  %v646_v55 = vsel %vm641_vm4, 1.0, %v594_v40  ;;  %v647_v61 = vsel %vm641_vm4, 1.0, %v596_v42  ;;  %v797_v7 = vmul.f32 2.0, %v1576_v24 }
 0x22b   : > { %v1411_v20 = vpop.eup %1410  ;;  %v1574_v21 = vmul.f32 %v1409_v19, %v1405_v16 }
 0x22c   : > { %v1413_v22 = vpop.eup %1412  ;;  %v592_v39 = vpop.permute.xlu1 %591  ;;  %v799_v14 = vmul.f32 %v797_v7, %v1576_v24 }
 0x22d   : > { %v570_v25 = vmul.f32 %v562_v54, %v1574_v21  ;;  %v574_v34 = vmul.f32 %v1560_v57, %v1574_v21  ;;  %v645_v47 = vsel %vm641_vm4, 1.0, %v592_v39  ;;  %v798_v4 = vmul.f32 2.0, %v1574_v21 }
 0x22e   : > { %v1415_v23 = vpop.eup %1414 }
 0x22f   : > { %v1579_v26 = vmul.f32 %v1415_v23, %v1411_v20  ;;  %v1417_v27 = vpop.eup %1416  ;;  %619 = vrot.lane.b32.xlu0 %v570_v25, %s1443_s20  ;;  %v800_v9 = vmul.f32 %v798_v4, %v1574_v21 }
 0x230   : > { %v1581_v28 = vmul.f32 %v1417_v27, %v1413_v22  ;;  %v598_v41 = vpop.permute.xlu1 %597  ;;  %v1281_v22 = vadd.f32 -1.0, %v799_v14 }
 0x231   : > { %v572_v29 = vmul.f32 %v564_v56, %v1579_v26  ;;  %v576_v35 = vmul.f32 %v1566_v59, %v1579_v26  ;;  %v648_v59 = vsel %vm641_vm4, 1.0, %v598_v41  ;;  %v960_v12 = vmul.f32 2.0, %v1579_v26 }
 0x232   : > { %v571_v31 = vmul.f32 %v1551_v52, %v1581_v28  ;;  %v575_v33 = vmul.f32 %v1562_v58, %v1581_v28  ;;  %v959_v16 = vmul.f32 2.0, %v1581_v28  ;;  %v1282_v18 = vadd.f32 -1.0, %v800_v9 }
 0x233   : > { %623 = vrot.lane.b32.xlu1 %v572_v29, %s1443_s20  ;;  %617 = vrot.lane.b32.xlu0 %v569_v30, %s1443_s20  ;;  %v962_v19 = vmul.f32 %v960_v12, %v1579_v26 }
 0x234   : > { %v600_v43 = vpop.permute.xlu1 %599  ;;  %v961_v23 = vmul.f32 %v959_v16, %v1581_v28 }
 0x235   : > { %v649_v1 = vsel %vm641_vm4, 1.0, %v600_v43  ;;  %v1289_v27 = vadd.f32 -1.0, %v962_v19 }
 0x237   : > { %621 = vrot.lane.b32.xlu1 %v571_v31, %s1443_s20  ;;  %625 = vrot.lane.b32.xlu0 %v573_v32, %s1443_s20  ;;  %v1288_v31 = vadd.f32 -1.0, %v961_v23 }
 0x23b   : > { %629 = vrot.lane.b32.xlu1 %v575_v33, %s1443_s20  ;;  %627 = vrot.lane.b32.xlu0 %v574_v34, %s1443_s20 }
 0x23f   : > { %631 = vrot.lane.b32.xlu1 %v576_v35, %s1443_s20 }
 0x2a1   : > { %v620_v45 = vpop.permute.xlu0 %619 }
 0x2a2   : > { %v652_v46 = vsel %vm650_vm3, %v643_v44, %v620_v45 }
 0x2a3   : > { %661 = vst.msk [vmem:[%s1599_s21 + $0x8] sm:$0xff] %vm659_vm5, %v652_v46 }
 0x2a5   : > { %v624_v48 = vpop.permute.xlu1 %623  ;;  %v618_v51 = vpop.permute.xlu0 %617 }
 0x2a6   : > { %v654_v50 = vsel %vm650_vm3, %v645_v47, %v624_v48  ;;  %v651_v52 = vsel %vm650_vm3, %v642_v49, %v618_v51 }
 0x2a7   : > { %663 = vst.msk [vmem:[%s1599_s21 + $0x18] sm:$0xff] %vm659_vm5, %v654_v50  ;;  %660 = vst.msk [vmem:[%s1599_s21] sm:$0xff] %vm659_vm5, %v651_v52  ;;  %1350 = vmatprep.mubr.msk.f32.mxu0 %vm659_vm5, %v651_v52 }
 0x2a8   : > { %1351 = vmatmul.mubr.msk.f32.vlgmr.msra.gmra.mxu0 %vm659_vm5, %v652_v46 }
 0x2a9   : > { %v622_v54 = vpop.permute.xlu1 %621  ;;  %v626_v57 = vpop.permute.xlu0 %625 }
 0x2aa   : > { %v653_v56 = vsel %vm650_vm3, %v644_v53, %v622_v54  ;;  %v655_v58 = vsel %vm650_vm3, %v646_v55, %v626_v57 }
 0x2ab   : > { %662 = vst.msk [vmem:[%s1599_s21 + $0x10] sm:$0xff] %vm659_vm5, %v653_v56  ;;  %1360 = vmatprep.mubr.msk.f32.mxu1 %vm659_vm5, %v653_v56  ;;  %664 = vst.msk [vmem:[%s1599_s21 + $0x20] sm:$0xff] %vm659_vm5, %v655_v58  ;;  %1353 = vmatprep.mubr.msk.f32.mxu0 %vm659_vm5, %v655_v58 }
 0x2ac   : > { %1361 = vmatmul.mubr.msk.f32.vlgmr.msra.gmra.mxu1 %vm659_vm5, %v654_v50 }
 0x2ad   : > { %v630_v60 = vpop.permute.xlu1 %629  ;;  %v628_v63 = vpop.permute.xlu0 %627 }
 0x2ae   : > { %v657_v62 = vsel %vm650_vm3, %v648_v59, %v630_v60  ;;  %v656_v0 = vsel %vm650_vm3, %v647_v61, %v628_v63 }
 0x2af   : > { %666 = vst.msk [vmem:[%s1599_s21 + $0x30] sm:$0xff] %vm659_vm5, %v657_v62  ;;  %1363 = vmatprep.mubr.msk.f32.mxu1 %vm659_vm5, %v657_v62  ;;  %665 = vst.msk [vmem:[%s1599_s21 + $0x28] sm:$0xff] %vm659_vm5, %v656_v0  ;;  %1354 = vmatmul.mubr.msk.f32.gmra.mxu0 %vm659_vm5, %v656_v0 }
 0x2b1   : > { %v632_v2 = vpop.permute.xlu1 %631 }
 0x2b2   : > { %v658_v3 = vsel %vm650_vm3, %v649_v1, %v632_v2 }
 0x2b3   : > { %667 = vst.msk [vmem:[%s1599_s21 + $0x38] sm:$0xff] %vm659_vm5, %v658_v3  ;;  %1364 = vmatmul.mubr.msk.f32.gmra.mxu1 %vm659_vm5, %v658_v3 }
 0x368   : > { %v1352_v5 = vpop.f32.mrf.mxu0 }
 0x369   : > { %v774_v6 = vmul.f32 %v1352_v5, %v1574_v21  ;;  %v804_v20 = vmul.f32 %v1352_v5, %v1282_v18 }
 0x36a   : > { %v754_v8 = vpop.f32.mrf.mxu0 }
 0x36b   : > { %v773_v10 = vmul.f32 %v754_v8, %v1576_v24  ;;  %783 = vrot.lane.b32.xlu1 %v774_v6, %s1444_s24  ;;  %v803_v25 = vmul.f32 %v1281_v22, %v754_v8 }
 0x36c   : > { %v1362_v11 = vpop.f32.mrf.mxu1 }
 0x36d   : > { %v936_v13 = vmul.f32 %v1362_v11, %v1579_v26  ;;  %781 = vrot.lane.b32.xlu0 %v773_v10, %s1444_s24  ;;  %v966_v30 = vmul.f32 %v1362_v11, %v1289_v27 }
 0x36e   : > { %v916_v15 = vpop.f32.mrf.mxu1 }
 0x36f   : > { %v935_v17 = vmul.f32 %v916_v15, %v1581_v28  ;;  %945 = vrot.lane.b32.xlu1 %v936_v13, %s1444_s24  ;;  %v1355_v29 = vpop.f32.mrf.mxu0  ;;  %v965_v32 = vmul.f32 %v1288_v31, %v916_v15 }
 0x370   : > { %v776_v35 = vmul.f32 %v1355_v29, %v1574_v21  ;;  %v806_v40 = vmul.f32 %v1355_v29, %v1282_v18 }
 0x371   : > { %943 = vrot.lane.b32.xlu0 %v935_v17, %s1444_s24  ;;  %v764_v33 = vpop.f32.mrf.mxu0 }
 0x372   : > { %v775_v36 = vmul.f32 %v764_v33, %v1576_v24  ;;  %v805_v41 = vmul.f32 %v1281_v22, %v764_v33 }
 0x373   : > { %813 = vrot.lane.b32.xlu1 %v804_v20, %s1445_s25  ;;  %v1365_v34 = vpop.f32.mrf.mxu1 }
 0x374   : > { %v938_v38 = vmul.f32 %v1365_v34, %v1579_v26  ;;  %v968_v21 = vmul.f32 %v1365_v34, %v1289_v27 }
 0x375   : > { %811 = vrot.lane.b32.xlu0 %v803_v25, %s1445_s25  ;;  %v926_v37 = vpop.f32.mrf.mxu1 }
 0x376   : > { %v937_v39 = vmul.f32 %v926_v37, %v1581_v28  ;;  %v967_v42 = vmul.f32 %v1288_v31, %v926_v37 }
 0x377   : > { %975 = vrot.lane.b32.xlu1 %v966_v30, %s1445_s25 }
 0x379   : > { %973 = vrot.lane.b32.xlu0 %v965_v32, %s1445_s25 }
 0x37b   : > { %787 = vrot.lane.b32.xlu1 %v776_v35, %s1444_s24 }
 0x37d   : > { %785 = vrot.lane.b32.xlu0 %v775_v36, %s1444_s24 }
 0x37f   : > { %949 = vrot.lane.b32.xlu1 %v938_v38, %s1444_s24 }
 0x381   : > { %947 = vrot.lane.b32.xlu0 %v937_v39, %s1444_s24 }
 0x383   : > { %817 = vrot.lane.b32.xlu1 %v806_v40, %s1445_s25 }
 0x385   : > { %815 = vrot.lane.b32.xlu0 %v805_v41, %s1445_s25 }
 0x387   : > { %979 = vrot.lane.b32.xlu1 %v968_v21, %s1445_s25 }
 0x389   : > { %977 = vrot.lane.b32.xlu0 %v967_v42, %s1445_s25 }
 0x3dd   : > { %v784_v24 = vpop.permute.xlu1 %783 }
 0x3de   : > { %v794_v45 = vadd.f32 %v1352_v5, %v784_v24 }
 0x3df   : > { %v782_v43 = vpop.permute.xlu0 %781 }
 0x3e0   : > { %v793_v28 = vadd.f32 %v782_v43, %v754_v8 }
 0x3e1   : > { %v946_v26 = vpop.permute.xlu1 %945 }
 0x3e2   : > { %v956_v49 = vadd.f32 %v1362_v11, %v946_v26 }
 0x3e3   : > { %v944_v44 = vpop.permute.xlu0 %943 }
 0x3e4   : > { %v955_v53 = vadd.f32 %v944_v44, %v916_v15 }
 0x3e5   : > { %v814_v46 = vpop.permute.xlu1 %813 }
 0x3e6   : > { %v824_v47 = vadd.f32 %v814_v46, %v794_v45 }
 0x3e7   : > { %v812_v48 = vpop.permute.xlu0 %811 }
 0x3e8   : > { %v828_v50 = vmax.f32 %v824_v47, 0.0  ;;  %v823_v51 = vadd.f32 %v812_v48, %v793_v28 }
 0x3e9   : > { %v976_v52 = vpop.permute.xlu1 %975 }
 0x3ea   : > { %832 = vst.msk [vmem:[%s1664_s26 + $0x8] sm:$0xff] %vm321_vm0, %v828_v50  ;;  %v827_v54 = vmax.f32 %v823_v51, 0.0  ;;  %v986_v55 = vadd.f32 %v976_v52, %v956_v49 }
 0x3eb   : > { %v974_v56 = vpop.permute.xlu0 %973 }
 0x3ec   : > { %831 = vst.msk [vmem:[%s1664_s26] sm:$0xff] %vm321_vm0, %v827_v54  ;;  %v990_v57 = vmax.f32 %v986_v55, 0.0  ;;  %v985_v58 = vadd.f32 %v974_v56, %v955_v53 }
 0x3ed   : > { %v788_v59 = vpop.permute.xlu1 %787 }
 0x3ee   : > { %1291 = vst.msk [vmem:[%s1664_s26 + $0x18] sm:$0xff] %vm321_vm0, %v990_v57  ;;  %v989_v60 = vmax.f32 %v985_v58, 0.0  ;;  %v796_v0 = vadd.f32 %v1355_v29, %v788_v59 }
 0x3ef   : > { %v786_v61 = vpop.permute.xlu0 %785 }
 0x3f0   : > { %1290 = vst.msk [vmem:[%s1664_s26 + $0x10] sm:$0xff] %vm321_vm0, %v989_v60  ;;  %v795_v2 = vadd.f32 %v786_v61, %v764_v33 }
 0x3f1   : > { %v950_v62 = vpop.permute.xlu1 %949  ;;  %v1057_v17 = vld [vmem:[%s1664_s26 + $0x8] sm:$0xff] (%p1502_p5) }
 0x3f2   : > { %v958_v5 = vadd.f32 %v1365_v34, %v950_v62  ;;  %1058 = vst [vmem:[%s1012_s30 + $0x8] sm:$0xff] (%p1502_p5), %v1057_v17 }
 0x3f3   : > { %v948_v63 = vpop.permute.xlu0 %947  ;;  %v1055_v16 = vld [vmem:[%s1664_s26] sm:$0xff] (%p1502_p5) }
 0x3f4   : > { %v957_v9 = vadd.f32 %v948_v63, %v926_v37  ;;  %1056 = vst [vmem:[%s1012_s30] sm:$0xff] (%p1502_p5), %v1055_v16 }
 0x3f5   : > { %v818_v1 = vpop.permute.xlu1 %817  ;;  %v1061_v19 = vld [vmem:[%s1664_s26 + $0x18] sm:$0xff] (%p1502_p5) }
 0x3f6   : > { %v826_v3 = vadd.f32 %v818_v1, %v796_v0  ;;  %1062 = vst [vmem:[%s1012_s30 + $0x18] sm:$0xff] (%p1502_p5), %v1061_v19 }
 0x3f7   : > { %v816_v4 = vpop.permute.xlu0 %815  ;;  %v1059_v18 = vld [vmem:[%s1664_s26 + $0x10] sm:$0xff] (%p1502_p5) }
 0x3f8   : > { %v830_v6 = vmax.f32 %v826_v3, 0.0  ;;  %v825_v7 = vadd.f32 %v816_v4, %v795_v2  ;;  %1060 = vst [vmem:[%s1012_s30 + $0x10] sm:$0xff] (%p1502_p5), %v1059_v18 }
 0x3f9   : > { %v980_v8 = vpop.permute.xlu1 %979 }
 0x3fa   : > { %834 = vst.msk [vmem:[%s1664_s26 + $0x28] sm:$0xff] %vm321_vm0, %v830_v6  ;;  %v829_v10 = vmax.f32 %v825_v7, 0.0  ;;  %v988_v11 = vadd.f32 %v980_v8, %v958_v5 }
 0x3fb   : > { %v978_v12 = vpop.permute.xlu0 %977 }
 0x3fc   : > { %833 = vst.msk [vmem:[%s1664_s26 + $0x20] sm:$0xff] %vm321_vm0, %v829_v10  ;;  %v992_v13 = vmax.f32 %v988_v11, 0.0  ;;  %v987_v14 = vadd.f32 %v978_v12, %v957_v9  ;;  %1008 = sbr.rel (!%p1502_p5) target bundleno = 1033 (0x409), region = 74 }
 0x3fe   : > { %1293 = vst.msk [vmem:[%s1664_s26 + $0x38] sm:$0xff] %vm321_vm0, %v992_v13  ;;  %v991_v15 = vmax.f32 %v987_v14, 0.0 }
 0x400   : > { %1292 = vst.msk [vmem:[%s1664_s26 + $0x30] sm:$0xff] %vm321_vm0, %v991_v15 }
 0x401   : > { %v1065_v22 = vld [vmem:[%s1664_s26 + $0x28] sm:$0xff] }
 0x402   : > { %1066 = vst [vmem:[%s1012_s30 + $0x48] sm:$0xff] %v1065_v22 }
 0x403   : > { %v1063_v20 = vld [vmem:[%s1664_s26 + $0x20] sm:$0xff] }
 0x404   : > { %1064 = vst [vmem:[%s1012_s30 + $0x40] sm:$0xff] %v1063_v20 }
 0x405   : > { %v1069_v25 = vld [vmem:[%s1664_s26 + $0x38] sm:$0xff] }
 0x406   : > { %1070 = vst [vmem:[%s1012_s30 + $0x58] sm:$0xff] %v1069_v25 }
 0x407   : > { %v1067_v23 = vld [vmem:[%s1664_s26 + $0x30] sm:$0xff] }
 0x408   : > { %1068 = vst [vmem:[%s1012_s30 + $0x50] sm:$0xff] %v1067_v23 }
 0x409 PF: > { %1076 = sbr.rel (!%p1502_p5) target bundleno = 1039 (0x40f), region = 112  ;;  %s1311_s5 = sshll.u32 (%p1502_p5), %s1487_s18, 5  ;;  %v1123_v27 = vld [vmem:[%s1599_s21] sm:$0xff] (%p1502_p5)  ;;  %v1125_v29 = vld [vmem:[%s1599_s21 + $0x8] sm:$0xff] (%p1502_p5)  ;;  %v1127_v30 = vld [vmem:[%s1599_s21 + $0x10] sm:$0xff] (%p1502_p5) }
 0x40a   : > { %s1080_s8 = scalar_lea.vmem (%p1502_p5), %s1724_s4, %s1311_s5  ;;  %v1129_v31 = vld [vmem:[%s1599_s21 + $0x18] sm:$0xff] (%p1502_p5)  ;;  %v1131_v32 = vld [vmem:[%s1599_s21 + $0x20] sm:$0xff] (%p1502_p5)  ;;  %v1133_v33 = vld [vmem:[%s1599_s21 + $0x28] sm:$0xff] (%p1502_p5) }
 0x40b   : > { %1124 = vst [vmem:[%s1080_s8] sm:$0xff] (%p1502_p5), %v1123_v27  ;;  %1126 = vst [vmem:[%s1080_s8 + $0x8] sm:$0xff] (%p1502_p5), %v1125_v29  ;;  %v1135_v34 = vld [vmem:[%s1599_s21 + $0x30] sm:$0xff] (%p1502_p5)  ;;  %v1137_v35 = vld [vmem:[%s1599_s21 + $0x38] sm:$0xff] (%p1502_p5) }
 0x40c   : > { %1128 = vst [vmem:[%s1080_s8 + $0x10] sm:$0xff] (%p1502_p5), %v1127_v30  ;;  %1130 = vst [vmem:[%s1080_s8 + $0x18] sm:$0xff] (%p1502_p5), %v1129_v31 }
 0x40d   : > { %1132 = vst [vmem:[%s1080_s8 + $0x40] sm:$0xff] (%p1502_p5), %v1131_v32  ;;  %1134 = vst [vmem:[%s1080_s8 + $0x48] sm:$0xff] (%p1502_p5), %v1133_v33 }
 0x40e   : > { %1136 = vst [vmem:[%s1080_s8 + $0x50] sm:$0xff] %v1135_v34  ;;  %1138 = vst [vmem:[%s1080_s8 + $0x58] sm:$0xff] %v1137_v35 }
 0x40f PF: > { %p12_p11 = scmp.ge.s32.totalorder %s1490_s19, 4   ;;  %s1726_s15 = smov %s1436_s16 }
 0x410   : > { %s1727_s16 = smov %s1500_s22  ;;  %s1728_s17 = smov %s1490_s19 }
 0x411   :  { %14 = sbr.rel (!%p12_p11) target bundleno = 2 (0x2), region = 200 }

</bundles_post_ra>
